<compile_context>
chip_gen: v7x
topology: tpu7x:2x2x1
jax: 0.10.0
libtpu: 0.0.40
codegen_flags: <defaults>
</compile_context>

<pallas_src>
import jax
import jax.numpy as jnp
from jax.experimental import pallas as pl
from jax.experimental.pallas import tpu as pltpu

_TN = 256  # output-column tile (multiple of 128; MXU-friendly on all gens)


def _round_up(x, m):
    return (x + m - 1) // m * m


def _vmem_capacity_bytes():
    # Generation-aware VMEM capacity (v5e/v6e: 128 MiB, v7x: 64 MiB per TC).
    try:
        return int(pltpu.get_tpu_info().vmem_capacity_bytes)
    except Exception:
        return 64 << 20  # conservative (v7x-sized) fallback


def _step_footprint_bytes(tm, tn, h, out_bytes):
    # Double-buffered VMEM footprint of one grid step:
    #   x tile (f32, cast in-kernel), weight panel (bf16), bias (f32),
    #   lm output tile, reward output tile.
    return 2 * (tm * h * 4 + h * tn * 2 + tn * 4 + 2 * tm * tn * out_bytes)


def _pick_tiles(m, h, out_bytes, vmem_cap):
    """Largest token tile whose double-buffered step fits ~half of VMEM."""
    tn = _TN
    budget = vmem_cap // 2
    tm_fit = 16
    for cand in (1024, 512, 256, 128, 64, 32, 16):
        if _step_footprint_bytes(cand, tn, h, out_bytes) <= budget:
            tm_fit = cand
            break
    # Never pad a tiny batch up to a huge tile; multiple of 16 keeps bf16
    # sublane packing clean for the in-kernel cast.
    tm = min(tm_fit, _round_up(max(m, 16), 16))
    m_pad = _round_up(m, tm)
    return tm, tn, m_pad


def prepare_merged_heads(lm_w, lm_b, rw_w, rw_b, *, tn=_TN):
    """Fuse lm_head + reward_score into one lane-dense (H, N) bf16 weight.

    Column layout of the fused weight / bias:
      [0, V)                lm_head columns (V padded up to a multiple of tn)
      [v_pad, v_pad + L)    reward columns (inside one full tn-wide slab)
    """
    H, V = lm_w.shape
    L = rw_w.shape[1]
    assert L <= tn, f"num_labels={L} must fit inside one {tn}-wide reward slab"
    v_pad = _round_up(V, tn)
    n_total = v_pad + tn  # multiple of tn by construction

    w = jnp.zeros((H, n_total), jnp.float32)
    w = w.at[:, :V].set(lm_w)
    w = w.at[:, v_pad:v_pad + L].set(rw_w)

    b = jnp.zeros((1, n_total), jnp.float32)
    b = b.at[:, :V].set(lm_b.reshape(1, V))
    b = b.at[:, v_pad:v_pad + L].set(rw_b.reshape(1, L))

    return {
        "w_cat": w.astype(jnp.bfloat16),  # bf16 weight stream for the MXU
        "b_cat": b,                       # f32 bias epilogue
        "vocab": V,
        "v_pad": v_pad,
        "labels": L,
    }


def _fused_heads_kernel(x_ref, w_ref, b_ref, lm_ref, rw_ref):
    j = pl.program_id(1)
    last = pl.num_programs(1) - 1
    # One MXU pass per (tm, tn) column panel: bf16 operands, f32 accumulation.
    acc = jnp.dot(x_ref[...].astype(jnp.bfloat16), w_ref[...],
                  preferred_element_type=jnp.float32)
    y = acc + b_ref[...]

    @pl.when(j < last)
    def _():
        lm_ref[...] = y.astype(lm_ref.dtype)

    @pl.when(j == last)
    def _():
        rw_ref[...] = y.astype(rw_ref.dtype)


def fused_heads(x, w_cat, b_cat, v_pad, *, out_dtype=jnp.bfloat16):
    """x: (M, H) f32, w_cat: (H, v_pad + _TN) bf16, b_cat: (1, v_pad + _TN) f32.

    Returns (lm_out (M, v_pad), rw_out (M, _TN)) in out_dtype.
    """
    M, H = x.shape
    N = w_cat.shape[1]
    tn = _TN
    assert N == v_pad + tn and v_pad % tn == 0, "bad fused head layout"

    out_bytes = jnp.finfo(out_dtype).bits // 8
    vmem_cap = _vmem_capacity_bytes()
    tm, tn, m_pad = _pick_tiles(M, H, out_bytes, vmem_cap)

    xp = x if m_pad == M else jnp.pad(x, ((0, m_pad - M), (0, 0)))

    nj_lm = v_pad // tn               # number of lm column panels
    grid = (m_pad // tm, nj_lm + 1)   # +1: trailing reward-slab step

    footprint = _step_footprint_bytes(tm, tn, H, out_bytes)
    vmem_limit = int(min(3 * vmem_cap // 4, max(32 << 20, 2 * footprint)))

    cost = pl.CostEstimate(
        flops=2 * m_pad * H * N,
        transcendentals=0,
        bytes_accessed=(m_pad * H * 4              # hidden, once per token tile
                        + grid[0] * H * N * 2      # weight re-streamed per token tile
                        + m_pad * N * out_bytes),  # lm + reward writeback
    )

    lm_out, rw_out = pl.pallas_call(
        _fused_heads_kernel,
        out_shape=(jax.ShapeDtypeStruct((m_pad, v_pad), out_dtype),
                   jax.ShapeDtypeStruct((m_pad, tn), out_dtype)),
        grid_spec=pltpu.PrefetchScalarGridSpec(
            num_scalar_prefetch=0,
            grid=grid,
            in_specs=[
                # hidden tile: block index constant in j -> DMA'd once per
                # token tile, reused across the whole column sweep.
                pl.BlockSpec((tm, H), lambda i, j: (i, 0)),
                # weight / bias panels stream over the fused output columns.
                pl.BlockSpec((H, tn), lambda i, j: (0, j)),
                pl.BlockSpec((1, tn), lambda i, j: (0, j)),
            ],
            out_specs=(
                # lm logits: one panel per lm step; the final (reward) step
                # revisits the last lm panel and the kernel skips the write,
                # so the resident buffer flushes unchanged.
                pl.BlockSpec((tm, tn),
                             lambda i, j: (i, jnp.minimum(j, nj_lm - 1))),
                # reward slab: resident across j, written only on the last step.
                pl.BlockSpec((tm, tn), lambda i, j: (i, 0)),
            ),
        ),
        compiler_params=pltpu.CompilerParams(
            # i: independent token tiles (megacore); j: revisited output
            # blocks -> must be "arbitrary".
            dimension_semantics=("parallel", "arbitrary"),
            vmem_limit_bytes=vmem_limit,
        ),
        cost_estimate=cost,
    )(xp, w_cat, b_cat)

    if m_pad != M:
        lm_out, rw_out = lm_out[:M], rw_out[:M]
    return lm_out, rw_out


def merged_model_forward(input_ids, params, *, out_dtype=jnp.bfloat16):
    """Mirrors MergedModel.forward: (base_outputs, lm_outputs, reward_outputs)."""
    B, S = input_ids.shape
    # --- base_model: deterministic synthetic hidden states (plain JAX glue) ---
    hidden = params["embed"][input_ids]                      # (B, S, H) f32
    H = hidden.shape[-1]
    x = hidden.reshape(B * S, H)

    heads = params["heads"]
    V, v_pad, L = heads["vocab"], heads["v_pad"], heads["labels"]
    lm_flat, rw_flat = fused_heads(x, heads["w_cat"], heads["b_cat"], v_pad,
                                   out_dtype=out_dtype)

    # No post-kernel slice over the logits when V is already a multiple of
    # the column tile (the common / demo case); reshape is metadata-only.
    lm_outputs = (lm_flat if v_pad == V else lm_flat[:, :V]).reshape(B, S, V)
    reward_outputs = rw_flat[:, :L].reshape(B, S, L)   # tiny (M x L) copy

    base_outputs = (hidden,)
    return base_outputs, lm_outputs, reward_outputs


def make_params(key, *, vocab=512, hidden=64, num_labels=2):
    k_emb, k_lm_w, k_lm_b, k_rw_w, k_rw_b = jax.random.split(key, 5)
    scale = 0.02
    lm_w = scale * jax.random.normal(k_lm_w, (hidden, vocab), jnp.float32)
    lm_b = scale * jax.random.normal(k_lm_b, (1, vocab), jnp.float32)
    rw_w = scale * jax.random.normal(k_rw_w, (hidden, num_labels), jnp.float32)
    rw_b = scale * jax.random.normal(k_rw_b, (1, num_labels), jnp.float32)
    return {
        # base_model embedding table (stands in for the transformer backbone)
        "embed": scale * jax.random.normal(k_emb, (vocab, hidden), jnp.float32),
        # original (PyTorch-equivalent) f32 projection weights, kept for checks
        "lm_w": lm_w, "lm_b": lm_b, "rw_w": rw_w, "rw_b": rw_b,
        # fused, lane-dense, bf16 weights actually consumed by the kernel
        "heads": prepare_merged_heads(lm_w, lm_b, rw_w, rw_b),
    }


if __name__ == "__main__":
    key = jax.random.PRNGKey(0)
    k_ids, k_params = jax.random.split(key)

    B, S, H, V, L = 2, 128, 64, 512, 2
    params = make_params(k_params, vocab=V, hidden=H, num_labels=L)
    input_ids = jax.random.randint(k_ids, (B, S), 0, V, dtype=jnp.int32)

    base_outputs, lm_outputs, reward_outputs = merged_model_forward(input_ids, params)
    jax.block_until_ready((base_outputs, lm_outputs, reward_outputs))

    # shapes match the PyTorch forward's semantics
    assert base_outputs[0].shape == (B, S, H)
    assert lm_outputs.shape == (B, S, V)
    assert reward_outputs.shape == (B, S, L)

    # numerics: f32-accumulated reference over the same bf16-cast operands the
    # kernel consumes; outputs are bf16, so the intended tolerance is the bf16
    # rounding of the final result (~0.4% relative), not f32 exactness.
    x = base_outputs[0].reshape(B * S, H)
    xb = x.astype(jnp.bfloat16).astype(jnp.float32)
    w_lm = params["lm_w"].astype(jnp.bfloat16).astype(jnp.float32)
    w_rw = params["rw_w"].astype(jnp.bfloat16).astype(jnp.float32)
    hi = jax.lax.Precision.HIGHEST
    ref_lm = jnp.dot(xb, w_lm, precision=hi) + params["lm_b"]
    ref_rw = jnp.dot(xb, w_rw, precision=hi) + params["rw_b"]
    got_lm = lm_outputs.reshape(B * S, V).astype(jnp.float32)
    got_rw = reward_outputs.reshape(B * S, L).astype(jnp.float32)
    assert jnp.allclose(got_lm, ref_lm, atol=2e-3), float(jnp.abs(got_lm - ref_lm).max())
    assert jnp.allclose(got_rw, ref_rw, atol=2e-3), float(jnp.abs(got_rw - ref_rw).max())

    print("KERNEL_OK")
</pallas_src>

<mosaic_0001>
module attributes {stable_mosaic.version = 11 : i64} {
  func.func @_fused_heads_kernel(%arg0: i32, %arg1: i32, %arg2: memref<256x64xf32, #tpu.memory_space<vmem>>, %arg3: memref<64x256xbf16, #tpu.memory_space<vmem>>, %arg4: memref<1x256xf32, #tpu.memory_space<vmem>>, %arg5: memref<256x256xbf16, #tpu.memory_space<vmem>>, %arg6: memref<256x256xbf16, #tpu.memory_space<vmem>>) attributes {dimension_semantics = [#tpu.dimension_semantics<parallel>, #tpu.dimension_semantics<arbitrary>], iteration_bounds = array<i64: 1, 3>, scalar_prefetch = 0 : i64, scratch_operands = 0 : i64, tpu.core_type = #tpu.core_type<tc>, window_params = [{transform_indices = @transform_0, window_bounds = array<i64: 256, 64>}, {transform_indices = @transform_1, window_bounds = array<i64: 64, 256>}, {transform_indices = @transform_2, window_bounds = array<i64: 1, 256>}, {transform_indices = @transform_3, window_bounds = array<i64: 256, 256>}, {transform_indices = @transform_4, window_bounds = array<i64: 256, 256>}]} {
    %c0 = arith.constant 0 : index
    %c0_0 = arith.constant 0 : index
    %0 = vector.load %arg2[%c0, %c0_0] : memref<256x64xf32, #tpu.memory_space<vmem>>, vector<256x64xf32>
    %1 = arith.truncf %0 : vector<256x64xf32> to vector<256x64xbf16>
    %c0_1 = arith.constant 0 : index
    %c0_2 = arith.constant 0 : index
    %2 = vector.load %arg3[%c0_1, %c0_2] : memref<64x256xbf16, #tpu.memory_space<vmem>>, vector<64x256xbf16>
    %cst = arith.constant dense<0.000000e+00> : vector<256x256xf32>
    %3 = tpu.matmul %1, %2, %cst {dimension_numbers = #tpu.dot_dimension_numbers<[1], [0], [0], [1], [0, 0, 1, 1], [], []>} : vector<256x64xbf16>, vector<64x256xbf16>, vector<256x256xf32> -> vector<256x256xf32>
    %c0_3 = arith.constant 0 : index
    %c0_4 = arith.constant 0 : index
    %4 = vector.load %arg4[%c0_3, %c0_4] : memref<1x256xf32, #tpu.memory_space<vmem>>, vector<1x256xf32>
    %5 = vector.broadcast %4 : vector<1x256xf32> to vector<256x256xf32>
    %6 = arith.addf %3, %5 : vector<256x256xf32>
    %c2_i32 = arith.constant 2 : i32
    %7 = arith.cmpi slt, %arg1, %c2_i32 : i32
    %8 = arith.extui %7 : i1 to i32
    %c0_i32 = arith.constant 0 : i32
    %9 = arith.cmpi ne, %8, %c0_i32 : i32
    scf.if %9 {
      %13 = arith.truncf %6 : vector<256x256xf32> to vector<256x256xbf16>
      %c0_7 = arith.constant 0 : index
      %c0_8 = arith.constant 0 : index
      %14 = vector.load %arg5[%c0_7, %c0_8] : memref<256x256xbf16, #tpu.memory_space<vmem>>, vector<256x256xbf16>
      tpu.vector_store %arg5[%c0_7, %c0_8], %13 {strides = array<i32>} : memref<256x256xbf16, #tpu.memory_space<vmem>>, vector<256x256xbf16>,
    } else {
    }
    %c2_i32_5 = arith.constant 2 : i32
    %10 = arith.cmpi eq, %arg1, %c2_i32_5 : i32
    %11 = arith.extui %10 : i1 to i32
    %c0_i32_6 = arith.constant 0 : i32
    %12 = arith.cmpi ne, %11, %c0_i32_6 : i32
    scf.if %12 {
      %13 = arith.truncf %6 : vector<256x256xf32> to vector<256x256xbf16>
      %c0_7 = arith.constant 0 : index
      %c0_8 = arith.constant 0 : index
      %14 = vector.load %arg6[%c0_7, %c0_8] : memref<256x256xbf16, #tpu.memory_space<vmem>>, vector<256x256xbf16>
      tpu.vector_store %arg6[%c0_7, %c0_8], %13 {strides = array<i32>} : memref<256x256xbf16, #tpu.memory_space<vmem>>, vector<256x256xbf16>,
    } else {
    }
    return
  }
  func.func @transform_0(%arg0: i32, %arg1: i32) -> (i32, i32) {
    %c0_i32 = arith.constant 0 : i32
    %c0_i32_0 = arith.constant 0 : i32
    return %arg0, %c0_i32 : i32, i32
  }
  func.func @transform_1(%arg0: i32, %arg1: i32) -> (i32, i32) {
    %c0_i32 = arith.constant 0 : i32
    %c0_i32_0 = arith.constant 0 : i32
    return %c0_i32, %arg1 : i32, i32
  }
  func.func @transform_2(%arg0: i32, %arg1: i32) -> (i32, i32) {
    %c0_i32 = arith.constant 0 : i32
    %c0_i32_0 = arith.constant 0 : i32
    return %c0_i32, %arg1 : i32, i32
  }
  func.func @transform_3(%arg0: i32, %arg1: i32) -> (i32, i32) {
    %c1_i32 = arith.constant 1 : i32
    %0 = arith.minsi %arg1, %c1_i32 : i32
    %c0_i32 = arith.constant 0 : i32
    return %arg0, %0 : i32, i32
  }
  func.func @transform_4(%arg0: i32, %arg1: i32) -> (i32, i32) {
    %c0_i32 = arith.constant 0 : i32
    %c0_i32_0 = arith.constant 0 : i32
    return %arg0, %c0_i32 : i32, i32
  }
}

</mosaic_0001>

<bundles_post_ra>
// kernel: tpu_custom_call.1
= control target key start
LH: loop header
LB: loop body
LE: loop exit
PB: predicated region body
PF: predicated region fallthrough
CT: control target
= control target key end

     0   :  { %10 = vsyncpa [#allocation4], 0  ;;  %s2400_s0 = inlined_call_operand.vmem [shape: f32[256,64], index: 0, kind: input, shape index: {}]   ;;  %s2401_s1 = inlined_call_operand.vmem [shape: bf16[64,768], index: 1, kind: input, shape index: {}]   ;;  %s2402_s2 = inlined_call_operand.vmem [shape: f32[1,768], index: 2, kind: input, shape index: {}]   ;;  %s2403_s3 = inlined_call_operand.hbm [shape: bf16[256,512], index: 3, kind: output, shape index: {0}]   ;;  %s2404_s4 = inlined_call_operand.hbm [shape: bf16[256,256], index: 4, kind: output, shape index: {1}]  }
   0x1   :  { %12 = vsyncpa [#allocation4 + $0x1], 0 }
   0x2   :  { %13 = vsyncpa [#allocation6], 0  ;;  %s1721_s15 = smov 0   ;;  %s1723_s16 = smov 0  }
   0x3   :  { %s1725_s17 = smov 0   ;;  %s1727_s18 = smov 0  }
   0x4   :  { %s1729_s19 = smov 0   ;;  %s1731_s20 = smov 0  }
   0x5   :  { %s1733_s21 = smov 0   ;;  %s1735_s22 = smov 0  }
   0x6 LB: > { %s1287_s23 = sadd.s32 4294967295, %s1688_s22   ;;  %s1288_s24 = sadd.s32 4294967294, %s1688_s22   ;;  %s1688_s22 = sphi %s1735_s22, %s19_s22   ;;  %s1684_s21 = sphi %s1733_s21, %s2472_s21   ;;  %s1680_s20 = sphi %s1731_s20, %s2471_s20   ;;  %s1676_s19 = sphi %s1729_s19, %s2470_s19   ;;  %s1672_s18 = sphi %s1727_s18, %s2469_s18   ;;  %s1668_s17 = sphi %s1725_s17, %s2468_s17   ;;  %s1664_s16 = sphi %s1723_s16, %s2467_s16   ;;  %s1660_s15 = sphi %s1721_s15, %s2466_s15  }
   0x7   : > { %s28_s25 = sadd.s32 1, %s1684_s21  ;;  %s64_s26 = sadd.s32 1, %s1676_s19 }
   0x8   : > { %p29_p0 = scmp.ge.s32.totalorder %s28_s25, 3  ;;  %p71_p1 = scmp.ne.s32.totalorder %s1676_s19, %s1672_s18 }
   0x9   : > { %p72_p2 = scmp.eq.s32.totalorder %s1688_s22, 0  ;;  %p113_p3 = scmp.lt.s32.totalorder %s1684_s21, 1 }
   0xa   : > { %s2474_s25 = smov (%p29_p0, %s28_s25), 0  ;;  %s122_s28 = sadd.s32 1, %s1668_s17 }
   0xb   : > { %p1771_p4 = por %p72_p2, %p71_p1  ;;  %s61_s29 = ssub.s32 %s1684_s21, %s2474_s25 }
   0xc   : > { %p115_p5 = scmp.lt.s32.totalorder %s2474_s25, 1  ;;  %p62_p6 = scmp.eq.s32.totalorder %s61_s29, 0 }
   0xd   : > { %p132_p7 = scmp.ne.s32.totalorder %s1668_s17, %s1664_s16  ;;  %p1786_p8 = scmp.eq.s32.totalorder %s1287_s23, 2 }
   0xe   : > { %s114_s30 = scalar_select %p113_p3, %s1684_s21, 1 }
   0xf   : > { %s1783_s5 = scalar_select %p62_p6, %s1676_s19, %s64_s26  }
  0x10   : > { %s116_s6 = scalar_select %p115_p5, %s2474_s25, 1 }
  0x11   : > { %p138_p9 = scmp.ne.s32.totalorder %s1664_s16, %s1660_s15  ;;  %p139_p10 = scmp.eq.s32.totalorder %s1288_s24, 2 }
  0x12   : > { %s118_s8 = ssub.s32 %s114_s30, %s116_s6  ;;  %p1794_p12 = por %p1786_p8, %p132_p7 }
  0x13   : > { %p120_p11 = scmp.eq.s32.totalorder %s118_s8, 0  ;;  %p1798_p13 = por %p139_p10, %p138_p9 }
  0x14   : > { %p1291_p0 = scmp.ge.s32.totalorder %s1688_s22, 3 }
  0x15   : > { %s1803_s11 = scalar_select %p120_p11, %s1668_s17, %s122_s28  }
  0x16   : > { %190 = sbr.rel (%p1291_p0) target bundleno = 37 (0x25), region = 20 }
  0x1d   : > { %193 = sbr.rel (!%p1771_p4) target bundleno = 37 (0x25), region = 24  ;;  %s195_s12 = sand.u32 (%p1771_p4), 1, %s1676_s19  }
  0x1e   : > { %s1396_s13 = sshll.u32 (%p1771_p4), %s1684_s21, 3  ;;  %s1292_s14 = sshll.u32 (%p1771_p4), %s195_s12, 6 }
  0x1f   : > { %s200_s26 = scalar_lea.vmem (%p1771_p4), %s2401_s1, %s1396_s13  ;;  %s197_s28 = scalar_lea.vmem (%p1771_p4), [#allocation2], %s1292_s14 }
  0x20   : > { %v242_v0 = vld [vmem:[%s200_s26] sm:$0xff] (%p1771_p4)  ;;  %v244_v1 = vld [vmem:[%s200_s26 + $0x18] sm:$0xff] (%p1771_p4)  ;;  %v246_v2 = vld [vmem:[%s200_s26 + $0x30] sm:$0xff] (%p1771_p4) }
  0x21   : > { %243 = vst [vmem:[%s197_s28] sm:$0xff] (%p1771_p4), %v242_v0  ;;  %245 = vst [vmem:[%s197_s28 + $0x8] sm:$0xff] (%p1771_p4), %v244_v1  ;;  %v248_v3 = vld [vmem:[%s200_s26 + $0x48] sm:$0xff] (%p1771_p4)  ;;  %v250_v4 = vld [vmem:[%s200_s26 + $0x60] sm:$0xff] (%p1771_p4) }
  0x22   : > { %247 = vst [vmem:[%s197_s28 + $0x10] sm:$0xff] (%p1771_p4), %v246_v2  ;;  %v252_v5 = vld [vmem:[%s200_s26 + $0x78] sm:$0xff] (%p1771_p4)  ;;  %249 = vst [vmem:[%s197_s28 + $0x18] sm:$0xff] (%p1771_p4), %v248_v3  ;;  %v254_v6 = vld [vmem:[%s200_s26 + $0x90] sm:$0xff] (%p1771_p4) }
  0x23   : > { %251 = vst [vmem:[%s197_s28 + $0x20] sm:$0xff] (%p1771_p4), %v250_v4  ;;  %253 = vst [vmem:[%s197_s28 + $0x28] sm:$0xff] (%p1771_p4), %v252_v5  ;;  %v256_v7 = vld [vmem:[%s200_s26 + $0xa8] sm:$0xff] (%p1771_p4) }
  0x24   : > { %255 = vst [vmem:[%s197_s28 + $0x30] sm:$0xff] %v254_v6  ;;  %257 = vst [vmem:[%s197_s28 + $0x38] sm:$0xff] %v256_v7 }
  0x25 PF: > { %p1295_p1 = scmp.ge.s32.totalorder %s1688_s22, 1  ;;  %p270_p2 = scmp.lt.s32.totalorder %s1688_s22, 4 }
  0x27   : > { %p271_p3 = pnand %p1295_p1, %p270_p2 }
  0x29   : > { %274 = sbr.rel (%p271_p3) target bundleno = 427 (0x1ab), region = 66 }
  0x30   : > { %s277_s27 = sand.u32 1, %s1672_s18   ;;  %s306_s29 = sand.u32 1, %s1664_s16   ;;  %v1690_v8 = vmov 0   ;;  %v329_v16 = vld [vmem:[%s2400_s0] sm:$0xff]  ;;  %v330_v17 = vld [vmem:[%s2400_s0 + $0x8] sm:$0xff]  ;;  %vm437_vm0 = vcmask 523264   ;;  %v387_v1 = vlaneseq }
  0x31   : > { %s1296_s30 = sshll.u32 %s277_s27, 6  ;;  %s1819_s6 = sshll.u32 %s306_s29, 8  ;;  %518 = vmatprep.mubr.bf16.mxu0 %v1690_v8  ;;  %598 = vmatprep.mubr.bf16.mxu1 %v1690_v8  ;;  %v345_v19 = vld [vmem:[%s2400_s0 + $0x80] sm:$0xff]  ;;  %v346_v20 = vld [vmem:[%s2400_s0 + $0x88] sm:$0xff]  ;;  %v361_v21 = vpack.c.bf16 %v330_v17, %v329_v16  ;;  %v331_v23 = vld [vmem:[%s2400_s0 + $0x10] sm:$0xff] }
  0x32   : > { %s279_s8 = scalar_lea.vmem [#allocation2], %s1296_s30  ;;  %v369_v22 = vpack.c.bf16 %v346_v20, %v345_v19  ;;  %v332_v24 = vld [vmem:[%s2400_s0 + $0x18] sm:$0xff]  ;;  %v347_v25 = vld [vmem:[%s2400_s0 + $0x90] sm:$0xff]  ;;  %v333_v29 = vld [vmem:[%s2400_s0 + $0x20] sm:$0xff]  ;;  %s1298_s30 = sshll.u32 %s1680_s20, 1  ;;  %v388_v2 = vshrl.u32 %v387_v1, 7 }
  0x33   : > { %v1552_v9 = vld [vmem:[%s279_s8 + $0x4] ss:$8 sps:$4 sm:$0xff]   ;;  %v1554_v10 = vld [vmem:[%s279_s8] ss:$8 sps:$4 sm:$0xff]   ;;  %v1555_v11 = vld [vmem:[%s279_s8 + $0x14] ss:$8 sps:$4 sm:$0xff]   ;;  %v362_v27 = vpack.c.bf16 %v332_v24, %v331_v23 }
  0x34   : > { %486 = vmatprep.subr.bf16.mxu0 %v1552_v9  ;;  %1462 = vmatprep.subr.bf16.mxu1 %v1552_v9  ;;  %v1557_v12 = vld [vmem:[%s279_s8 + $0x10] ss:$8 sps:$4 sm:$0xff]   ;;  %v1558_v13 = vld [vmem:[%s279_s8 + $0x24] ss:$8 sps:$4 sm:$0xff]   ;;  %v1560_v14 = vld [vmem:[%s279_s8 + $0x20] ss:$8 sps:$4 sm:$0xff]  }
  0x35   : > { %487 = vmatpush1.bf16.msra.mxu0 %v1554_v10  ;;  %1466 = vmatpush1.bf16.msra.mxu1 %v1554_v10  ;;  %v1561_v15 = vld [vmem:[%s279_s8 + $0x34] ss:$8 sps:$4 sm:$0xff]   ;;  %v1563_v18 = vld [vmem:[%s279_s8 + $0x30] ss:$8 sps:$4 sm:$0xff]   ;;  %v334_v30 = vld [vmem:[%s2400_s0 + $0x28] sm:$0xff]  ;;  %p319_p4 = scmp.lt.s32.totalorder %s1298_s30, 5 }
  0x36   : > { %488 = vmatprep.subr.bf16.mxu0 %v1555_v11  ;;  %1463 = vmatprep.subr.bf16.mxu1 %v1555_v11  ;;  %v348_v26 = vld [vmem:[%s2400_s0 + $0x98] sm:$0xff]  ;;  %v349_v31 = vld [vmem:[%s2400_s0 + $0xa0] sm:$0xff]  ;;  %v350_v32 = vld [vmem:[%s2400_s0 + $0xa8] sm:$0xff]  ;;  %v363_v33 = vpack.c.bf16 %v334_v30, %v333_v29  ;;  %v389_v3 = vsub.s32 0, %v388_v2  ;;  %v393_v5 = vsub.s32 1, %v388_v2  ;;  %s2150_s13 = scalar_lea.vmem [#allocation3], %s1819_s6 }
  0x37   : > { %v370_v28 = vpack.c.bf16 %v348_v26, %v347_v25  ;;  %v371_v34 = vpack.c.bf16 %v350_v32, %v349_v31  ;;  %v335_v35 = vld [vmem:[%s2400_s0 + $0x30] sm:$0xff]  ;;  %v336_v36 = vld [vmem:[%s2400_s0 + $0x38] sm:$0xff]  ;;  %v337_v41 = vld [vmem:[%s2400_s0 + $0x40] sm:$0xff]  ;;  %s2476_s30 = smov (!%p319_p4, %s1298_s30), 5  ;;  %p1323_p5 = scmp.ge.s32.totalorder %s1680_s20, 2 }
  0x38   : > { %v351_v37 = vld [vmem:[%s2400_s0 + $0xb0] sm:$0xff]  ;;  %v352_v38 = vld [vmem:[%s2400_s0 + $0xb8] sm:$0xff]  ;;  %v364_v39 = vpack.c.bf16 %v336_v36, %v335_v35  ;;  %v338_v42 = vld [vmem:[%s2400_s0 + $0x48] sm:$0xff]  ;;  %s321_s12 = scalar_lea.vmem %s2402_s2, %s2476_s30 }
  0x39   : > { %489 = vmatpush1.bf16.msra.mxu0 %v1557_v12  ;;  %1467 = vmatpush1.bf16.msra.mxu1 %v1557_v12  ;;  %v372_v40 = vpack.c.bf16 %v352_v38, %v351_v37  ;;  %v353_v43 = vld [vmem:[%s2400_s0 + $0xc0] sm:$0xff]  ;;  %v354_v44 = vld [vmem:[%s2400_s0 + $0xc8] sm:$0xff]  ;;  %v365_v45 = vpack.c.bf16 %v338_v42, %v337_v41  ;;  %v339_v47 = vld [vmem:[%s2400_s0 + $0x50] sm:$0xff] }
  0x3a   : > { %490 = vmatprep.subr.bf16.mxu0 %v1558_v13  ;;  %1464 = vmatprep.subr.bf16.mxu1 %v1558_v13  ;;  %v373_v46 = vpack.c.bf16 %v354_v44, %v353_v43  ;;  %v340_v48 = vld [vmem:[%s2400_s0 + $0x58] sm:$0xff]  ;;  %v355_v49 = vld [vmem:[%s2400_s0 + $0xd0] sm:$0xff]  ;;  %v341_v53 = vld [vmem:[%s2400_s0 + $0x60] sm:$0xff] }
  0x3b   : > { %v356_v50 = vld [vmem:[%s2400_s0 + $0xd8] sm:$0xff]  ;;  %v366_v51 = vpack.c.bf16 %v340_v48, %v339_v47  ;;  %v342_v54 = vld [vmem:[%s2400_s0 + $0x68] sm:$0xff]  ;;  %v357_v55 = vld [vmem:[%s2400_s0 + $0xe0] sm:$0xff] }
  0x3c   : > { %v374_v52 = vpack.c.bf16 %v356_v50, %v355_v49  ;;  %v358_v56 = vld [vmem:[%s2400_s0 + $0xe8] sm:$0xff]  ;;  %v367_v57 = vpack.c.bf16 %v342_v54, %v341_v53  ;;  %v343_v59 = vld [vmem:[%s2400_s0 + $0x70] sm:$0xff]  ;;  %v344_v60 = vld [vmem:[%s2400_s0 + $0x78] sm:$0xff] }
  0x3d   : > { %491 = vmatpush1.bf16.msra.mxu0 %v1560_v14  ;;  %1468 = vmatpush1.bf16.msra.mxu1 %v1560_v14  ;;  %v375_v58 = vpack.c.bf16 %v358_v56, %v357_v55  ;;  %v359_v61 = vld [vmem:[%s2400_s0 + $0xf0] sm:$0xff]  ;;  %v360_v62 = vld [vmem:[%s2400_s0 + $0xf8] sm:$0xff]  ;;  %v368_v63 = vpack.c.bf16 %v344_v60, %v343_v59  ;;  %v385_v4 = vld [vmem:[%s321_s12] sm:$0x3] }
  0x3e   : > { %492 = vmatprep.subr.bf16.mxu0 %v1561_v15  ;;  %1465 = vmatprep.subr.bf16.mxu1 %v1561_v15  ;;  %v376_v0 = vpack.c.bf16 %v360_v62, %v359_v61  ;;  %v1953_v6 = vrot.slane %v385_v4, %v389_v3  ;;  %v1955_v7 = vrot.slane %v385_v4, %v393_v5 }
  0x41   : > { %493 = vmatpush1.bf16.msra.mxu0 %v1563_v18  ;;  %1469 = vmatpush1.bf16.msra.mxu1 %v1563_v18 }
  0x44   : > { %1307 = vmatmul.mubr.msk.bf16.vlgmr.msra.gmra.mrb[0].mxu0 %vm437_vm0, %v361_v21  ;;  %1315 = vmatmul.mubr.msk.bf16.vlgmr.msra.gmra.mrb[0].mxu1 %vm437_vm0, %v369_v22 }
  0x45   : > { %528 = vmatprep.mubr.bf16.mxu0 %v1690_v8  ;;  %608 = vmatprep.mubr.bf16.mxu1 %v1690_v8 }
  0x4c   : > { %1308 = vmatmul.mubr.msk.bf16.gmra.mrb[4].mxu0 %vm437_vm0, %v362_v27  ;;  %1316 = vmatmul.mubr.msk.bf16.gmra.mrb[4].mxu1 %vm437_vm0, %v370_v28 }
  0x4d   : > { %538 = vmatprep.mubr.bf16.mxu0 %v1690_v8  ;;  %618 = vmatprep.mubr.bf16.mxu1 %v1690_v8 }
  0x54   : > { %1309 = vmatmul.mubr.msk.bf16.gmra.mrb[8].mxu0 %vm437_vm0, %v363_v33  ;;  %1317 = vmatmul.mubr.msk.bf16.gmra.mrb[8].mxu1 %vm437_vm0, %v371_v34 }
  0x55   : > { %548 = vmatprep.mubr.bf16.mxu0 %v1690_v8  ;;  %628 = vmatprep.mubr.bf16.mxu1 %v1690_v8 }
  0x5c   : > { %1310 = vmatmul.mubr.msk.bf16.gmra.mrb[12].mxu0 %vm437_vm0, %v364_v39  ;;  %1318 = vmatmul.mubr.msk.bf16.gmra.mrb[12].mxu1 %vm437_vm0, %v372_v40 }
  0x5d   : > { %558 = vmatprep.mubr.bf16.mxu0 %v1690_v8  ;;  %638 = vmatprep.mubr.bf16.mxu1 %v1690_v8 }
  0x64   : > { %1311 = vmatmul.mubr.msk.bf16.gmra.mrb[16].mxu0 %vm437_vm0, %v365_v45  ;;  %1319 = vmatmul.mubr.msk.bf16.gmra.mrb[16].mxu1 %vm437_vm0, %v373_v46 }
  0x65   : > { %568 = vmatprep.mubr.bf16.mxu0 %v1690_v8  ;;  %648 = vmatprep.mubr.bf16.mxu1 %v1690_v8 }
  0x6c   : > { %1312 = vmatmul.mubr.msk.bf16.gmra.mrb[20].mxu0 %vm437_vm0, %v366_v51  ;;  %1320 = vmatmul.mubr.msk.bf16.gmra.mrb[20].mxu1 %vm437_vm0, %v374_v52 }
  0x6d   : > { %578 = vmatprep.mubr.bf16.mxu0 %v1690_v8  ;;  %658 = vmatprep.mubr.bf16.mxu1 %v1690_v8 }
  0x74   : > { %1313 = vmatmul.mubr.msk.bf16.gmra.mrb[24].mxu0 %vm437_vm0, %v367_v57  ;;  %1321 = vmatmul.mubr.msk.bf16.gmra.mrb[24].mxu1 %vm437_vm0, %v375_v58 }
  0x75   : > { %588 = vmatprep.mubr.bf16.mxu0 %v1690_v8  ;;  %668 = vmatprep.mubr.bf16.mxu1 %v1690_v8 }
  0x7c   : > { %1314 = vmatmul.mubr.msk.bf16.gmra.mrb[28].mxu0 %vm437_vm0, %v368_v63  ;;  %1322 = vmatmul.mubr.msk.bf16.gmra.mrb[28].mxu1 %vm437_vm0, %v376_v0 }
 0x117   : > { %v520_v8 = vpop.f32.mrb[0].mxu0  ;;  %v600_v9 = vpop.f32.mrb[0].mxu1 }
 0x118   : > { %v1958_v10 = vadd.f32 %v520_v8, %v1953_v6  ;;  %v1961_v11 = vadd.f32 %v600_v9, %v1953_v6  ;;  %v522_v12 = vpop.f32.mrb[1].mxu0  ;;  %v602_v13 = vpop.f32.mrb[1].mxu1 }
 0x119   : > { %v1964_v14 = vadd.f32 %v522_v12, %v1955_v7  ;;  %v1967_v15 = vadd.f32 %v602_v13, %v1955_v7  ;;  %v524_v16 = vpop.f32.mrb[2].mxu0  ;;  %v604_v17 = vpop.f32.mrb[2].mxu1 }
 0x11a   : > { %v1970_v18 = vadd.f32 %v524_v16, %v1953_v6  ;;  %v1973_v19 = vadd.f32 %v604_v17, %v1953_v6  ;;  %v526_v20 = vpop.f32.mrb[3].mxu0  ;;  %v606_v21 = vpop.f32.mrb[3].mxu1 }
 0x11b   : > { %v1976_v22 = vadd.f32 %v526_v20, %v1955_v7  ;;  %v1979_v23 = vadd.f32 %v606_v21, %v1955_v7 }
 0x11f   : > { %v530_v24 = vpop.f32.mrb[4].mxu0  ;;  %v610_v25 = vpop.f32.mrb[4].mxu1 }
 0x120   : > { %v1982_v26 = vadd.f32 %v530_v24, %v1953_v6  ;;  %v1985_v27 = vadd.f32 %v610_v25, %v1953_v6  ;;  %v532_v28 = vpop.f32.mrb[5].mxu0  ;;  %v612_v29 = vpop.f32.mrb[5].mxu1 }
 0x121   : > { %v1988_v30 = vadd.f32 %v532_v28, %v1955_v7  ;;  %v1991_v31 = vadd.f32 %v612_v29, %v1955_v7  ;;  %v534_v32 = vpop.f32.mrb[6].mxu0  ;;  %v614_v33 = vpop.f32.mrb[6].mxu1 }
 0x122   : > { %v1994_v34 = vadd.f32 %v534_v32, %v1953_v6  ;;  %v1997_v35 = vadd.f32 %v614_v33, %v1953_v6  ;;  %v536_v36 = vpop.f32.mrb[7].mxu0  ;;  %v616_v37 = vpop.f32.mrb[7].mxu1 }
 0x123   : > { %v2000_v38 = vadd.f32 %v536_v36, %v1955_v7  ;;  %v2003_v39 = vadd.f32 %v616_v37, %v1955_v7 }
 0x127   : > { %v540_v40 = vpop.f32.mrb[8].mxu0  ;;  %v620_v41 = vpop.f32.mrb[8].mxu1 }
 0x128   : > { %v2006_v42 = vadd.f32 %v540_v40, %v1953_v6  ;;  %v2009_v43 = vadd.f32 %v620_v41, %v1953_v6  ;;  %v542_v44 = vpop.f32.mrb[9].mxu0  ;;  %v622_v45 = vpop.f32.mrb[9].mxu1 }
 0x129   : > { %v2012_v46 = vadd.f32 %v542_v44, %v1955_v7  ;;  %v2015_v47 = vadd.f32 %v622_v45, %v1955_v7  ;;  %v544_v48 = vpop.f32.mrb[10].mxu0  ;;  %v624_v49 = vpop.f32.mrb[10].mxu1 }
 0x12a   : > { %v2018_v50 = vadd.f32 %v544_v48, %v1953_v6  ;;  %v2021_v51 = vadd.f32 %v624_v49, %v1953_v6  ;;  %v546_v52 = vpop.f32.mrb[11].mxu0  ;;  %v626_v53 = vpop.f32.mrb[11].mxu1 }
 0x12b   : > { %2420 = vst [vmem:[#allocation9_spill] sm:$0xff] %v2012_v46  ;;  %v2024_v54 = vadd.f32 %v546_v52, %v1955_v7  ;;  %v2027_v55 = vadd.f32 %v626_v53, %v1955_v7 }
 0x12d   : > { %2421 = vst [vmem:[#allocation10_spill] sm:$0xff] %v2024_v54 }
 0x12f   : > { %v550_v56 = vpop.f32.mrb[12].mxu0  ;;  %v630_v57 = vpop.f32.mrb[12].mxu1 }
 0x130   : > { %v2030_v58 = vadd.f32 %v550_v56, %v1953_v6  ;;  %v2033_v59 = vadd.f32 %v630_v57, %v1953_v6  ;;  %v552_v60 = vpop.f32.mrb[13].mxu0  ;;  %v632_v61 = vpop.f32.mrb[13].mxu1 }
 0x131   : > { %v2036_v62 = vadd.f32 %v552_v60, %v1955_v7  ;;  %v2039_v63 = vadd.f32 %v632_v61, %v1955_v7  ;;  %v554_v0 = vpop.f32.mrb[14].mxu0  ;;  %v634_v1 = vpop.f32.mrb[14].mxu1 }
 0x132   : > { %v2042_v2 = vadd.f32 %v554_v0, %v1953_v6  ;;  %v2045_v3 = vadd.f32 %v634_v1, %v1953_v6  ;;  %v556_v4 = vpop.f32.mrb[15].mxu0  ;;  %v636_v5 = vpop.f32.mrb[15].mxu1 }
 0x133   : > { %2422 = vst [vmem:[#allocation11_spill] sm:$0xff] %v2036_v62  ;;  %2423 = vst [vmem:[#allocation12_spill] sm:$0xff] %v2039_v63  ;;  %v2048_v8 = vadd.f32 %v556_v4, %v1955_v7  ;;  %v2051_v9 = vadd.f32 %v636_v5, %v1955_v7 }
 0x134   : > { %2424 = vst [vmem:[#allocation13_spill] sm:$0xff] %v2045_v3 }
 0x135   : > { %2425 = vst [vmem:[#allocation14_spill] sm:$0xff] %v2048_v8  ;;  %2426 = vst [vmem:[#allocation15_spill] sm:$0xff] %v2051_v9 }
 0x137   : > { %v560_v12 = vpop.f32.mrb[16].mxu0  ;;  %v640_v13 = vpop.f32.mrb[16].mxu1 }
 0x138   : > { %v2054_v16 = vadd.f32 %v560_v12, %v1953_v6  ;;  %v2057_v17 = vadd.f32 %v640_v13, %v1953_v6  ;;  %v562_v20 = vpop.f32.mrb[17].mxu0  ;;  %v642_v21 = vpop.f32.mrb[17].mxu1 }
 0x139   : > { %v2060_v24 = vadd.f32 %v562_v20, %v1955_v7  ;;  %v2063_v25 = vadd.f32 %v642_v21, %v1955_v7  ;;  %v564_v28 = vpop.f32.mrb[18].mxu0  ;;  %v644_v29 = vpop.f32.mrb[18].mxu1 }
 0x13a   : > { %2427 = vst [vmem:[#allocation16_spill] sm:$0xff] %v2057_v17  ;;  %v2066_v32 = vadd.f32 %v564_v28, %v1953_v6  ;;  %v2069_v33 = vadd.f32 %v644_v29, %v1953_v6  ;;  %v566_v36 = vpop.f32.mrb[19].mxu0  ;;  %v646_v37 = vpop.f32.mrb[19].mxu1 }
 0x13b   : > { %2428 = vst [vmem:[#allocation17_spill] sm:$0xff] %v2063_v25  ;;  %v2072_v40 = vadd.f32 %v566_v36, %v1955_v7  ;;  %v2075_v41 = vadd.f32 %v646_v37, %v1955_v7 }
 0x13c   : > { %2429 = vst [vmem:[#allocation18_spill] sm:$0xff] %v2069_v33 }
 0x13d   : > { %2430 = vst [vmem:[#allocation19_spill] sm:$0xff] %v2075_v41 }
 0x13f   : > { %v570_v44 = vpop.f32.mrb[20].mxu0  ;;  %v650_v45 = vpop.f32.mrb[20].mxu1 }
 0x140   : > { %v2078_v48 = vadd.f32 %v570_v44, %v1953_v6  ;;  %v2081_v49 = vadd.f32 %v650_v45, %v1953_v6  ;;  %v572_v52 = vpop.f32.mrb[21].mxu0  ;;  %v652_v53 = vpop.f32.mrb[21].mxu1 }
 0x141   : > { %v2084_v56 = vadd.f32 %v572_v52, %v1955_v7  ;;  %v2087_v57 = vadd.f32 %v652_v53, %v1955_v7  ;;  %v574_v60 = vpop.f32.mrb[22].mxu0  ;;  %v654_v61 = vpop.f32.mrb[22].mxu1 }
 0x142   : > { %v2090_v0 = vadd.f32 %v574_v60, %v1953_v6  ;;  %v2093_v1 = vadd.f32 %v654_v61, %v1953_v6  ;;  %v576_v4 = vpop.f32.mrb[23].mxu0  ;;  %v656_v5 = vpop.f32.mrb[23].mxu1 }
 0x143   : > { %2431 = vst [vmem:[#allocation20_spill] sm:$0xff] %v2087_v57  ;;  %v2096_v12 = vadd.f32 %v576_v4, %v1955_v7  ;;  %v2099_v13 = vadd.f32 %v656_v5, %v1955_v7 }
 0x144   : > { %2432 = vst [vmem:[#allocation21_spill] sm:$0xff] %v2093_v1 }
 0x145   : > { %2433 = vst [vmem:[#allocation22_spill] sm:$0xff] %v2099_v13 }
 0x147   : > { %v580_v20 = vpop.f32.mrb[24].mxu0  ;;  %v660_v21 = vpop.f32.mrb[24].mxu1 }
 0x148   : > { %v2102_v28 = vadd.f32 %v580_v20, %v1953_v6  ;;  %v2105_v29 = vadd.f32 %v660_v21, %v1953_v6  ;;  %v582_v36 = vpop.f32.mrb[25].mxu0  ;;  %v662_v37 = vpop.f32.mrb[25].mxu1 }
 0x149   : > { %v2108_v44 = vadd.f32 %v582_v36, %v1955_v7  ;;  %v2111_v45 = vadd.f32 %v662_v37, %v1955_v7  ;;  %v584_v52 = vpop.f32.mrb[26].mxu0  ;;  %v664_v53 = vpop.f32.mrb[26].mxu1 }
 0x14a   : > { %2434 = vst [vmem:[#allocation23_spill] sm:$0xff] %v2105_v29  ;;  %v2114_v60 = vadd.f32 %v584_v52, %v1953_v6  ;;  %v2117_v61 = vadd.f32 %v664_v53, %v1953_v6  ;;  %v586_v4 = vpop.f32.mrb[27].mxu0  ;;  %v666_v5 = vpop.f32.mrb[27].mxu1 }
 0x14b   : > { %2435 = vst [vmem:[#allocation24_spill] sm:$0xff] %v2111_v45  ;;  %v2120_v20 = vadd.f32 %v586_v4, %v1955_v7  ;;  %v2123_v21 = vadd.f32 %v666_v5, %v1955_v7 }
 0x14c   : > { %2436 = vst [vmem:[#allocation25_spill] sm:$0xff] %v2117_v61 }
 0x14d   : > { %2437 = vst [vmem:[#allocation26_spill] sm:$0xff] %v2123_v21  ;;  %682 = sbr.rel (%p1323_p5) target bundleno = 356 (0x164), region = 74 }
 0x14f   : > { %v590_v36 = vpop.f32.mrb[28].mxu0  ;;  %v670_v37 = vpop.f32.mrb[28].mxu1 }
 0x150   : > { %v2126_v45 = vadd.f32 %v590_v36, %v1953_v6  ;;  %v2129_v52 = vadd.f32 %v670_v37, %v1953_v6  ;;  %v592_v29 = vpop.f32.mrb[29].mxu0  ;;  %v672_v53 = vpop.f32.mrb[29].mxu1 }
 0x151   : > { %v2132_v61 = vadd.f32 %v592_v29, %v1955_v7  ;;  %v2135_v4 = vadd.f32 %v672_v53, %v1955_v7  ;;  %v594_v13 = vpop.f32.mrb[30].mxu0  ;;  %v674_v5 = vpop.f32.mrb[30].mxu1  ;;  %v1401_v29 = vpack.c.bf16 (!%p1323_p5), %v2012_v46, %v2006_v42  ;;  %v1402_v53 = vpack.c.bf16 (!%p1323_p5), %v2024_v54, %v2018_v50 }
 0x152   : > { %2438 = vst [vmem:[#allocation27_spill] sm:$0xff] %v2129_v52  ;;  %v2138_v21 = vadd.f32 %v594_v13, %v1953_v6  ;;  %v2141_v1 = vadd.f32 %v674_v5, %v1953_v6  ;;  %v596_v36 = vpop.f32.mrb[31].mxu0  ;;  %v676_v57 = vpop.f32.mrb[31].mxu1  ;;  %v1397_v6 = vpack.c.bf16 (!%p1323_p5), %v1964_v14, %v1958_v10  ;;  %v1398_v13 = vpack.c.bf16 (!%p1323_p5), %v1976_v22, %v1970_v18 }
 0x153   : > { %v2144_v37 = vadd.f32 %v596_v36, %v1955_v7  ;;  %v2147_v52 = vadd.f32 %v676_v57, %v1955_v7  ;;  %v1399_v7 = vpack.c.bf16 (!%p1323_p5), %v1988_v30, %v1982_v26  ;;  %v1400_v57 = vpack.c.bf16 (!%p1323_p5), %v2000_v38, %v1994_v34  ;;  %879 = vst [vmem:[%s2150_s13 + $0x20] sm:$0xff] (!%p1323_p5), %v1401_v29 }
 0x154   : > { %v1403_v5 = vpack.c.bf16 %v2036_v62, %v2030_v58  ;;  %v1404_v36 = vpack.c.bf16 %v2048_v8, %v2042_v2  ;;  %875 = vst [vmem:[%s2150_s13] sm:$0xff] %v1397_v6  ;;  %876 = vst [vmem:[%s2150_s13 + $0x8] sm:$0xff] %v1398_v13  ;;  %v1405_v46 = vpack.c.bf16 %v2060_v24, %v2054_v16 }
 0x155   : > { %877 = vst [vmem:[%s2150_s13 + $0x10] sm:$0xff] %v1399_v7  ;;  %878 = vst [vmem:[%s2150_s13 + $0x18] sm:$0xff] %v1400_v57  ;;  %v1406_v54 = vpack.c.bf16 %v2072_v40, %v2066_v32  ;;  %v1407_v62 = vpack.c.bf16 %v2084_v56, %v2078_v48  ;;  %v1408_v8 = vpack.c.bf16 %v2096_v12, %v2090_v0 }
 0x156   : > { %880 = vst [vmem:[%s2150_s13 + $0x28] sm:$0xff] %v1402_v53  ;;  %881 = vst [vmem:[%s2150_s13 + $0x30] sm:$0xff] %v1403_v5  ;;  %v1409_v6 = vpack.c.bf16 %v2108_v44, %v2102_v28  ;;  %v1410_v13 = vpack.c.bf16 %v2120_v20, %v2114_v60  ;;  %v1411_v7 = vpack.c.bf16 %v2132_v61, %v2126_v45 }
 0x157   : > { %882 = vst [vmem:[%s2150_s13 + $0x38] sm:$0xff] %v1404_v36  ;;  %v1412_v57 = vpack.c.bf16 %v2144_v37, %v2138_v21  ;;  %883 = vst [vmem:[%s2150_s13 + $0x40] sm:$0xff] %v1405_v46  ;;  %v1413_v29 = vpack.c.bf16 %v1967_v15, %v1961_v11  ;;  %v1414_v53 = vpack.c.bf16 %v1979_v23, %v1973_v19 }
 0x158   : > { %884 = vst [vmem:[%s2150_s13 + $0x48] sm:$0xff] %v1406_v54  ;;  %885 = vst [vmem:[%s2150_s13 + $0x50] sm:$0xff] %v1407_v62  ;;  %v1415_v5 = vpack.c.bf16 %v1991_v31, %v1985_v27  ;;  %v1416_v36 = vpack.c.bf16 %v2003_v39, %v1997_v35  ;;  %v1417_v46 = vpack.c.bf16 %v2015_v47, %v2009_v43 }
 0x159   : > { %886 = vst [vmem:[%s2150_s13 + $0x58] sm:$0xff] %v1408_v8  ;;  %887 = vst [vmem:[%s2150_s13 + $0x60] sm:$0xff] %v1409_v6  ;;  %v1418_v54 = vpack.c.bf16 %v2027_v55, %v2021_v51  ;;  %v1419_v62 = vpack.c.bf16 %v2039_v63, %v2033_v59  ;;  %v1420_v8 = vpack.c.bf16 %v2051_v9, %v2045_v3  ;;  %v2440_v9 = vld [vmem:[#allocation21_spill] sm:$0xff]  ;;  %v2445_v3 = vld [vmem:[#allocation26_spill] sm:$0xff] }
 0x15a   : > { %888 = vst [vmem:[%s2150_s13 + $0x68] sm:$0xff] %v1410_v13  ;;  %889 = vst [vmem:[%s2150_s13 + $0x70] sm:$0xff] %v1411_v7  ;;  %v1421_v6 = vpack.c.bf16 %v2063_v25, %v2057_v17  ;;  %v1422_v13 = vpack.c.bf16 %v2075_v41, %v2069_v33  ;;  %v2439_v7 = vld [vmem:[#allocation20_spill] sm:$0xff]  ;;  %v2444_v17 = vld [vmem:[#allocation25_spill] sm:$0xff] }
 0x15b   : > { %890 = vst [vmem:[%s2150_s13 + $0x78] sm:$0xff] %v1412_v57  ;;  %891 = vst [vmem:[%s2150_s13 + $0x80] sm:$0xff] %v1413_v29  ;;  %v1423_v57 = vpack.c.bf16 %v2439_v7, %v2081_v49  ;;  %v2441_v29 = vld [vmem:[#allocation22_spill] sm:$0xff]  ;;  %v1426_v63 = vpack.c.bf16 %v2445_v3, %v2444_v17  ;;  %v2446_v41 = vld [vmem:[#allocation27_spill] sm:$0xff]  ;;  %v1428_v7 = vpack.c.bf16 %v2147_v52, %v2141_v1 }
 0x15c   : > { %892 = vst [vmem:[%s2150_s13 + $0x88] sm:$0xff] %v1414_v53  ;;  %893 = vst [vmem:[%s2150_s13 + $0x90] sm:$0xff] %v1415_v5  ;;  %v1424_v53 = vpack.c.bf16 %v2441_v29, %v2440_v9  ;;  %v2442_v5 = vld [vmem:[#allocation23_spill] sm:$0xff]  ;;  %v1427_v33 = vpack.c.bf16 %v2135_v4, %v2446_v41 }
 0x15d   : > { %894 = vst [vmem:[%s2150_s13 + $0x98] sm:$0xff] %v1416_v36  ;;  %895 = vst [vmem:[%s2150_s13 + $0xa0] sm:$0xff] %v1417_v46  ;;  %v2443_v36 = vld [vmem:[#allocation24_spill] sm:$0xff] }
 0x15e   : > { %896 = vst [vmem:[%s2150_s13 + $0xa8] sm:$0xff] %v1418_v54  ;;  %897 = vst [vmem:[%s2150_s13 + $0xb0] sm:$0xff] %v1419_v62  ;;  %v1425_v25 = vpack.c.bf16 %v2443_v36, %v2442_v5 }
 0x15f   : > { %898 = vst [vmem:[%s2150_s13 + $0xb8] sm:$0xff] %v1420_v8  ;;  %899 = vst [vmem:[%s2150_s13 + $0xc0] sm:$0xff] %v1421_v6 }
 0x160   : > { %900 = vst [vmem:[%s2150_s13 + $0xc8] sm:$0xff] %v1422_v13  ;;  %901 = vst [vmem:[%s2150_s13 + $0xd0] sm:$0xff] %v1423_v57 }
 0x161   : > { %902 = vst [vmem:[%s2150_s13 + $0xd8] sm:$0xff] %v1424_v53  ;;  %903 = vst [vmem:[%s2150_s13 + $0xe0] sm:$0xff] %v1425_v25 }
 0x162   : > { %904 = vst [vmem:[%s2150_s13 + $0xe8] sm:$0xff] %v1426_v63  ;;  %905 = vst [vmem:[%s2150_s13 + $0xf0] sm:$0xff] %v1427_v33 }
 0x163   : > { %906 = vst [vmem:[%s2150_s13 + $0xf8] sm:$0xff] %v1428_v7 }
 0x164 PF: > { %p1356_p6 = scmp.ne.s32.totalorder %s1680_s20, 2 }
 0x165   : > { %v1429_v3 = vpack.c.bf16 (!%p1356_p6), %v1964_v14, %v1958_v10  ;;  %v1430_v9 = vpack.c.bf16 (!%p1356_p6), %v1976_v22, %v1970_v18  ;;  %v1431_v17 = vpack.c.bf16 (!%p1356_p6), %v1988_v30, %v1982_v26  ;;  %v1432_v41 = vpack.c.bf16 (!%p1356_p6), %v2000_v38, %v1994_v34  ;;  %v2447_v63 = vld [vmem:[#allocation9_spill] sm:$0xff] (!%p1356_p6)  ;;  %v2448_v33 = vld [vmem:[#allocation10_spill] sm:$0xff] (!%p1356_p6)  ;;  %v2449_v54 = vld [vmem:[#allocation11_spill] sm:$0xff] (!%p1356_p6) }
 0x166   : > { %910 = sbr.rel (%p1356_p6) target bundleno = 375 (0x177), region = 78  ;;  %v1433_v25 = vpack.c.bf16 (!%p1356_p6), %v2447_v63, %v2006_v42  ;;  %v1434_v46 = vpack.c.bf16 (!%p1356_p6), %v2448_v33, %v2018_v50  ;;  %v1435_v62 = vpack.c.bf16 (!%p1356_p6), %v2449_v54, %v2030_v58  ;;  %v2450_v10 = vld [vmem:[#allocation14_spill] sm:$0xff] (!%p1356_p6)  ;;  %v1437_v18 = vpack.c.bf16 (!%p1356_p6), %v2060_v24, %v2054_v16 }
 0x167   : > { %v1436_v14 = vpack.c.bf16 (!%p1356_p6), %v2450_v10, %v2042_v2  ;;  %1103 = vst [vmem:[#allocation5] sm:$0xff] (!%p1356_p6), %v1429_v3  ;;  %1104 = vst [vmem:[#allocation5 + $0x8] sm:$0xff] (!%p1356_p6), %v1430_v9  ;;  %v1438_v22 = vpack.c.bf16 (!%p1356_p6), %v2072_v40, %v2066_v32  ;;  %v1439_v26 = vpack.c.bf16 (!%p1356_p6), %v2084_v56, %v2078_v48  ;;  %v2457_v56 = vld [vmem:[#allocation19_spill] sm:$0xff] (!%p1356_p6) }
 0x168   : > { %1105 = vst [vmem:[#allocation5 + $0x10] sm:$0xff] (!%p1356_p6), %v1431_v17  ;;  %1106 = vst [vmem:[#allocation5 + $0x18] sm:$0xff] (!%p1356_p6), %v1432_v41  ;;  %v1440_v30 = vpack.c.bf16 (!%p1356_p6), %v2096_v12, %v2090_v0  ;;  %v1441_v34 = vpack.c.bf16 (!%p1356_p6), %v2108_v44, %v2102_v28  ;;  %v1442_v38 = vpack.c.bf16 (!%p1356_p6), %v2120_v20, %v2114_v60  ;;  %v2462_v28 = vld [vmem:[#allocation24_spill] sm:$0xff] (!%p1356_p6)  ;;  %v2464_v60 = vld [vmem:[#allocation26_spill] sm:$0xff] (!%p1356_p6) }
 0x169   : > { %1107 = vst [vmem:[#allocation5 + $0x20] sm:$0xff] (!%p1356_p6), %v1433_v25  ;;  %1108 = vst [vmem:[#allocation5 + $0x28] sm:$0xff] (!%p1356_p6), %v1434_v46  ;;  %v1443_v42 = vpack.c.bf16 (!%p1356_p6), %v2132_v61, %v2126_v45  ;;  %v1444_v50 = vpack.c.bf16 (!%p1356_p6), %v2144_v37, %v2138_v21  ;;  %v1445_v58 = vpack.c.bf16 (!%p1356_p6), %v1967_v15, %v1961_v11  ;;  %v2451_v11 = vld [vmem:[#allocation12_spill] sm:$0xff] (!%p1356_p6)  ;;  %v2463_v45 = vld [vmem:[#allocation25_spill] sm:$0xff] (!%p1356_p6) }
 0x16a   : > { %1109 = vst [vmem:[#allocation5 + $0x30] sm:$0xff] (!%p1356_p6), %v1435_v62  ;;  %1110 = vst [vmem:[#allocation5 + $0x38] sm:$0xff] (!%p1356_p6), %v1436_v14  ;;  %v1446_v2 = vpack.c.bf16 (!%p1356_p6), %v1979_v23, %v1973_v19  ;;  %v1447_v16 = vpack.c.bf16 (!%p1356_p6), %v1991_v31, %v1985_v27  ;;  %v1448_v24 = vpack.c.bf16 (!%p1356_p6), %v2003_v39, %v1997_v35  ;;  %v2452_v19 = vld [vmem:[#allocation13_spill] sm:$0xff] (!%p1356_p6)  ;;  %v2453_v23 = vld [vmem:[#allocation15_spill] sm:$0xff] (!%p1356_p6) }
 0x16b   : > { %1111 = vst [vmem:[#allocation5 + $0x40] sm:$0xff] (!%p1356_p6), %v1437_v18  ;;  %1112 = vst [vmem:[#allocation5 + $0x48] sm:$0xff] (!%p1356_p6), %v1438_v22  ;;  %v1449_v32 = vpack.c.bf16 (!%p1356_p6), %v2015_v47, %v2009_v43  ;;  %v1450_v40 = vpack.c.bf16 (!%p1356_p6), %v2027_v55, %v2021_v51  ;;  %v1451_v15 = vpack.c.bf16 (!%p1356_p6), %v2451_v11, %v2033_v59  ;;  %v2454_v27 = vld [vmem:[#allocation16_spill] sm:$0xff] (!%p1356_p6)  ;;  %v2455_v31 = vld [vmem:[#allocation17_spill] sm:$0xff] (!%p1356_p6) }
 0x16c   : > { %1113 = vst [vmem:[#allocation5 + $0x50] sm:$0xff] (!%p1356_p6), %v1439_v26  ;;  %1114 = vst [vmem:[#allocation5 + $0x58] sm:$0xff] (!%p1356_p6), %v1440_v30  ;;  %v1452_v48 = vpack.c.bf16 (!%p1356_p6), %v2453_v23, %v2452_v19  ;;  %v1453_v35 = vpack.c.bf16 (!%p1356_p6), %v2455_v31, %v2454_v27  ;;  %v2456_v39 = vld [vmem:[#allocation18_spill] sm:$0xff] (!%p1356_p6)  ;;  %v2458_v43 = vld [vmem:[#allocation20_spill] sm:$0xff] (!%p1356_p6)  ;;  %v1458_v61 = vpack.c.bf16 (!%p1356_p6), %v2464_v60, %v2463_v45 }
 0x16d   : > { %1115 = vst [vmem:[#allocation5 + $0x60] sm:$0xff] %v1441_v34  ;;  %1116 = vst [vmem:[#allocation5 + $0x68] sm:$0xff] %v1442_v38  ;;  %v1454_v0 = vpack.c.bf16 %v2457_v56, %v2456_v39  ;;  %v1455_v47 = vpack.c.bf16 %v2458_v43, %v2081_v49  ;;  %v2459_v51 = vld [vmem:[#allocation21_spill] sm:$0xff]  ;;  %v2460_v55 = vld [vmem:[#allocation22_spill] sm:$0xff]  ;;  %v1460_v37 = vpack.c.bf16 %v2147_v52, %v2141_v1 }
 0x16e   : > { %1117 = vst [vmem:[#allocation5 + $0x70] sm:$0xff] %v1443_v42  ;;  %1118 = vst [vmem:[#allocation5 + $0x78] sm:$0xff] %v1444_v50  ;;  %v1456_v12 = vpack.c.bf16 %v2460_v55, %v2459_v51  ;;  %v2461_v59 = vld [vmem:[#allocation23_spill] sm:$0xff] }
 0x16f   : > { %1119 = vst [vmem:[#allocation5 + $0x80] sm:$0xff] %v1445_v58  ;;  %1120 = vst [vmem:[#allocation5 + $0x88] sm:$0xff] %v1446_v2  ;;  %v1457_v44 = vpack.c.bf16 %v2462_v28, %v2461_v59  ;;  %v2465_v20 = vld [vmem:[#allocation27_spill] sm:$0xff] }
 0x170   : > { %1121 = vst [vmem:[#allocation5 + $0x90] sm:$0xff] %v1447_v16  ;;  %1122 = vst [vmem:[#allocation5 + $0x98] sm:$0xff] %v1448_v24  ;;  %v1459_v21 = vpack.c.bf16 %v2135_v4, %v2465_v20 }
 0x171   : > { %1123 = vst [vmem:[#allocation5 + $0xa0] sm:$0xff] %v1449_v32  ;;  %1124 = vst [vmem:[#allocation5 + $0xa8] sm:$0xff] %v1450_v40 }
 0x172   : > { %1125 = vst [vmem:[#allocation5 + $0xb0] sm:$0xff] %v1451_v15  ;;  %1126 = vst [vmem:[#allocation5 + $0xb8] sm:$0xff] %v1452_v48 }
 0x173   : > { %1127 = vst [vmem:[#allocation5 + $0xc0] sm:$0xff] %v1453_v35  ;;  %1128 = vst [vmem:[#allocation5 + $0xc8] sm:$0xff] %v1454_v0 }
 0x174   : > { %1129 = vst [vmem:[#allocation5 + $0xd0] sm:$0xff] %v1455_v47  ;;  %1130 = vst [vmem:[#allocation5 + $0xd8] sm:$0xff] %v1456_v12 }
 0x175   : > { %1131 = vst [vmem:[#allocation5 + $0xe0] sm:$0xff] %v1457_v44  ;;  %1132 = vst [vmem:[#allocation5 + $0xe8] sm:$0xff] %v1458_v61 }
 0x176   : > { %1133 = vst [vmem:[#allocation5 + $0xf0] sm:$0xff] %v1459_v21  ;;  %1134 = vst [vmem:[#allocation5 + $0xf8] sm:$0xff] %v1460_v37 }
 0x177 PF: > { %p1143_p7 = scmp.lt.s32.totalorder %s1680_s20, 1  ;;  %s1154_s6 = sshll.u32 %s2150_s13, 4  ;;  %s2317_s6 = int_to_ptr.vmem [resolvable:$true] %s1154_s6 }
 0x178   : > { %s2326_s28 = scalar_lea.sflag [#allocation4], %s306_s29  ;;  %s1564_s27 = scalar_lea.vmem %s2317_s6, 4096 }
 0x179   : > { %s2478_s20 = smov (!%p1143_p7, %s1680_s20), 1  ;;  %p1565_p9 = scmp.ne.s32.totalorder %s2317_s6, %s1564_s27 }
 0x17a   : > { %s1461_s14 = sshll.u32 %s2478_s20, 7  ;;  %s1691_s30 = smov [#allocation3]  }
 0x17b   : > { %s2322_s26 = scalar_lea.hbm %s2403_s3, %s1461_s14  ;;  %p1566_p10 = pnand %p1565_p9, %p1794_p12 }
 0x17c   : > { %s1568_s8 = sshll.u32 %s1691_s30, 4  ;;  %s1569_s8 = int_to_ptr.vmem [resolvable:$false] %s1568_s8 }
 0x17d   : > { %p1567_p11 = pneg %p1566_p10  ;;  %s1570_s18 = scalar_lea.vmem %s1569_s8, 8192 }
 0x17e   : > { %p1571_p0 = scmp.lt.s32.totalorder %s2317_s6, %s1569_s8  ;;  %p1572_p1 = scmp.lt.s32.totalorder %s1570_s18, %s1564_s27 }
 0x180   : > { %p1573_p2 = por %p1572_p1, %p1571_p0 }
 0x182   : > { %p1574_p3 = pnand %p1573_p2, %p1567_p11 }
 0x184   : > { %1577 = shalt.err (!%p1574_p3)
}
 0x185   : > { %s1578_s20 = scalar_lea.hbm %s2322_s26, 4096  ;;  %s1582_s13 = scalar_lea.hbm %s2403_s3, 8192 }
 0x186   : > { %p1579_p4 = scmp.ne.s32.totalorder %s2322_s26, %s1578_s20  ;;  %p1583_p7 = scmp.lt.u32.totalorder %s2322_s26, %s2403_s3 }
 0x187   : > { %p1584_p9 = scmp.lt.u32.totalorder %s1582_s13, %s1578_s20  ;;  %p1586_p11 = scmp.lt.u32.totalorder %s1578_s20, %s2322_s26 }
 0x188   : > { %p1580_p5 = pnand %p1579_p4, %p1794_p12 }
 0x189   : > { %p1585_p10 = por %p1584_p9, %p1583_p7 }
 0x18a   : > { %p1581_p6 = pneg %p1580_p5 }
 0x18b   : > { %p1587_p0 = por %p1586_p11, %p1585_p10 }
 0x18d   : > { %p1588_p1 = pnand %p1587_p0, %p1581_p6 }
 0x18f   : > { %1591 = shalt.err (!%p1588_p1)
}
 0x190   : > { %s1692_s24 = smov 128   ;;  %s1693_s27 = smov 256  }
 0x191   : > { %s1694_s30 = smov 8   ;;  %s1695_s8 = smov [#allocation5]  }
 0x192   : > { %1470 = dma.vmem_to_hbm [thread:$0]  (%p1794_p12), %s2317_s6, 4096, %s2322_s26, %s2326_s28, %s1692_s24, %s1693_s27, %s1694_s30  }
 0x193   : > { %s1171_s18 = sshll.u32 %s1695_s8, 4  ;;  %s1172_s18 = int_to_ptr.vmem [resolvable:$true] %s1171_s18 }
 0x194   : > { %s1592_s29 = scalar_lea.vmem %s1172_s18, 4096  ;;  %p1599_p5 = scmp.lt.s32.totalorder %s1172_s18, %s1172_s18 }
 0x195   : > { %p1593_p2 = scmp.ne.s32.totalorder %s1172_s18, %s1592_s29  ;;  %p1600_p6 = scmp.lt.s32.totalorder %s1592_s29, %s1592_s29 }
 0x197   : > { %p1594_p3 = pnand %p1593_p2, %p1786_p8  ;;  %p1601_p7 = por %p1600_p6, %p1599_p5 }
 0x199   : > { %p1595_p4 = pneg %p1594_p3 }
 0x19b   : > { %p1602_p9 = pnand %p1601_p7, %p1595_p4 }
 0x19d   : > { %1605 = shalt.err (!%p1602_p9)
}
 0x19e   : > { %s1606_s13 = scalar_lea.hbm %s2404_s4, 4096 }
 0x19f   : > { %p1607_p12 = scmp.ne.s32.totalorder %s2404_s4, %s1606_s13  ;;  %p1612_p0 = scmp.lt.u32.totalorder %s1606_s13, %s2404_s4 }
 0x1a1   : > { %p1608_p10 = pnand %p1607_p12, %p1786_p8 }
 0x1a3   : > { %p1609_p11 = pneg %p1608_p10 }
 0x1a5   : > { %p1614_p1 = pnand %p1612_p0, %p1609_p11 }
 0x1a7   : > { %1617 = shalt.err (!%p1614_p1)
}
 0x1a8   : > { %1472 = dma.vmem_to_hbm [thread:$0]  (%p1786_p8), %s1172_s18, 4096, %s2404_s4, [#allocation6], %s1692_s24, %s1692_s24, %s1694_s30  }
 0x1a9   : > { %1651 = dma.done.wait (%p1786_p8), [#allocation6], 4096  }
 0x1aa   : > { %1653 = vsyncadd (%p1786_p8), [#allocation6], 4294963200 }
 0x1ab PF: > { %p1482_p2 = scmp.ge.s32.totalorder %s1688_s22, 2  ;;  %s1190_s27 = sand.u32 1, %s1660_s15  }
 0x1ac   : > { %s1191_s8 = scalar_lea.sflag [#allocation4], %s1190_s27 }
 0x1ad   : > { %p1477_p3 = pnand %p1482_p2, %p1798_p13 }
 0x1af   : > { %1655 = dma.done.wait (!%p1477_p3), %s1191_s8, 4096  }
 0x1b0   : > { %1657 = vsyncadd (!%p1477_p3), %s1191_s8, 4294963200  ;;  %s19_s22 = sadd.s32 1, %s1688_s22   ;;  %s2466_s15 = smov %s1664_s16 }
 0x1b1   : > { %p16_p4 = scmp.ge.s32.totalorder %s19_s22, 5   ;;  %s2467_s16 = smov %s1668_s17 }
 0x1b2   : > { %s2468_s17 = smov %s1803_s11  ;;  %s2469_s18 = smov %s1676_s19 }
 0x1b3   : > { %s2470_s19 = smov %s1783_s5  ;;  %s2471_s20 = smov %s1684_s21 }
 0x1b4   : > { %s2472_s21 = smov %s2474_s25  ;;  %18 = sbr.rel (!%p16_p4) target bundleno = 6 (0x6), region = 133 }
 0x1bb   :  { %1196 = vsyncpa [#allocation4], 1 }
 0x1bc   :  { %1198 = vsyncpa [#allocation4 + $0x1], 1 }
 0x1bd   :  { %1199 = vsyncpa [#allocation6], 1 }

</bundles_post_ra>
